<compile_context>
chip_gen: v5e
topology: v5e:2x2
jax: 0.10.0
libtpu: 0.0.40
codegen_flags: <defaults>
</compile_context>

<pallas_src>
import functools

import jax
import jax.numpy as jnp
from jax.experimental import pallas as pl
from jax.experimental.pallas import tpu as pltpu


def quant_kernel(x_ref, w1_ref, b1_ref, w2_ref, b2_ref, mask_ref,
                 deq_ref, q_ref, *, S, C):
    # x_ref : (Cin, TQ)    w1: (S*C, Cin)   b1: (S*C, 1)
    # w2    : (Cin, S*C)   b2: (Cin, 1)     mask: (C, 1)  per-channel keep-mask
    # deq   : (Cin, TQ)    q : (S*C, TQ)
    x = jnp.maximum(x_ref[...], 0.0)                       # conv_before[0]: ReLU (f32)

    # conv_before[1]: 1x1 conv == (S*C, Cin) @ (Cin, TQ).  K = Cin is tiny; the kernel
    # is HBM-bound, not MXU-bound, so a single MXU dot per tile is fine.
    h = jnp.dot(w1_ref[...], x.astype(w1_ref.dtype),
                preferred_element_type=jnp.float32) + b1_ref[...]   # (S*C, TQ) f32
    y = -jnp.abs(h)

    # Hard argmax over the symbol axis.  Channel index = s*C + c, so symbol s is the
    # sublane slice y[s*C:(s+1)*C]; C is a multiple of 8 in practice so these slices
    # are tile-aligned (no lane permutes).  Strict '>' keeps the first maximal symbol
    # (torch.argmax convention).  softmax/temp only matter for the STE backward path
    # and are not needed in the forward pass.
    best = y[0:C, :]
    best_idx = jnp.zeros_like(best, dtype=jnp.int32)
    for s in range(1, S):
        ys = y[s * C:(s + 1) * C, :]
        better = ys > best
        best = jnp.where(better, ys, best)
        best_idx = jnp.where(better, s, best_idx)

    # One-hot over symbols fused with the per-channel mask: a single select per symbol
    # against the lane-broadcast (C, 1) mask replaces (==, cast, concat, multiply).
    mask_c = mask_ref[...]                                               # (C, 1) f32
    q = jnp.concatenate(
        [jnp.where(best_idx == s, mask_c, 0.0) for s in range(S)], axis=0)  # (S*C, TQ)
    q_cast = q.astype(q_ref.dtype)                # values are exactly {0, 1}: lossless
    q_ref[...] = q_cast

    # conf_after: 1x1 conv ((Cin, S*C) @ (S*C, TQ)) + ReLU
    d = jnp.dot(w2_ref[...], q_cast.astype(w2_ref.dtype),
                preferred_element_type=jnp.float32) + b2_ref[...]
    deq_ref[...] = jnp.maximum(d, 0.0).astype(deq_ref.dtype)


def _pick_spatial_tile(hw, cin, sc, q_bytes, budget_bytes=8 * 2**20):
    """Largest lane-aligned (multiple of 128) divisor of H*W whose double-buffered
    VMEM footprint stays under `budget_bytes` (fits comfortably on v7x's 64 MiB)."""
    if hw % 128 != 0:
        return hw                                      # full-array block is always legal
    per_col = 2 * (cin * 4 + cin * 4 + sc * q_bytes)   # x + deq (f32) + q, 2-deep buffers
    best = 128
    t = 128
    while t <= hw:
        if hw % t == 0 and per_col * t <= budget_bytes:
            best = t
        t += 128
    return best


def quant_layer_forward(x_nchw, params, channel_percentage=1.0,
                        *, q_dtype=jnp.bfloat16, compute_dtype=jnp.bfloat16):
    """Returns (dequantized (B,Cin,H,W) f32, quantized (B,S*C,H,W) q_dtype).

    quantized values are exactly {0., 1.}, so the bf16 output is lossless and halves
    the HBM writeback of the largest tensor.  Pass q_dtype=compute_dtype=jnp.float32
    for an all-f32 path (e.g. strict parity checks / v5e elementwise concerns).
    """
    C_min = params["no_channels_min"]
    C = params["no_channels"]
    S = params["no_channel_symbols"]
    SC = S * C

    B, Cin, H, W = x_nchw.shape
    HW = H * W
    x = x_nchw.reshape(B, Cin, HW).astype(jnp.float32)        # channels-first: no transpose

    # Matmul operands in compute_dtype (bf16-native MXU on v6e/v7x); accumulation and
    # all elementwise math stay in f32 (v5e has no bf16 VPU path).
    w1 = params["w1"].astype(compute_dtype)                   # (S*C, Cin)
    w2 = params["w2"].astype(compute_dtype)                   # (Cin, S*C)
    b1 = params["b1"].astype(jnp.float32).reshape(SC, 1)
    b2 = params["b2"].astype(jnp.float32).reshape(Cin, 1)

    # calc_num_channels(channel_percentage, C_min, C)
    # TODO(synk): helper source not provided; using round(min + pct*(max-min)),
    # which yields the full channel count at channel_percentage=1.
    pct = jnp.atleast_1d(jnp.asarray(channel_percentage, jnp.float32))
    n_ch = jnp.clip(jnp.round(C_min + pct * (C - C_min)), 0, C).astype(jnp.int32)
    # Per-channel keep mask (shared by all symbols) -> (n, C, 1)
    mask = (jnp.arange(C)[None, :] < n_ch[:, None]).astype(jnp.float32)[:, :, None]
    n_masks = mask.shape[0]                                   # 1 (scalar pct) or B
    if n_masks not in (1, B):
        raise ValueError("channel_percentage must be a scalar or have size batch")
    mask_map = (lambda b, t: (0, 0, 0)) if n_masks == 1 else (lambda b, t: (b, 0, 0))

    q_bytes = jnp.dtype(q_dtype).itemsize
    TQ = _pick_spatial_tile(HW, Cin, SC, q_bytes)
    num_t = HW // TQ

    # Explicit VMEM budget (v7x: 64 MiB physical / 32 MiB scoped by default).
    tile_bytes = 2 * (Cin * TQ * 4 + Cin * TQ * 4 + SC * TQ * q_bytes)
    wt_bytes = 2 * (w1.size * w1.dtype.itemsize + w2.size * w2.dtype.itemsize
                    + SC * 4 + Cin * 4 + C * 4)
    vmem_limit = int(min(32 * 2**20, max(16 * 2**20, tile_bytes + wt_bytes + 2 * 2**20)))

    kernel = functools.partial(quant_kernel, S=S, C=C)
    deq, q = pl.pallas_call(
        kernel,
        out_shape=(
            jax.ShapeDtypeStruct((B, Cin, HW), jnp.float32),
            jax.ShapeDtypeStruct((B, SC, HW), q_dtype),
        ),
        grid_spec=pltpu.PrefetchScalarGridSpec(
            num_scalar_prefetch=0,
            grid=(B, num_t),
            in_specs=[
                pl.BlockSpec((None, Cin, TQ), lambda b, t: (b, 0, t)),   # x tile
                pl.BlockSpec((SC, Cin), lambda b, t: (0, 0)),            # w1 (resident)
                pl.BlockSpec((SC, 1), lambda b, t: (0, 0)),              # b1
                pl.BlockSpec((Cin, SC), lambda b, t: (0, 0)),            # w2
                pl.BlockSpec((Cin, 1), lambda b, t: (0, 0)),             # b2
                pl.BlockSpec((None, C, 1), mask_map),                    # channel mask
            ],
            out_specs=[
                pl.BlockSpec((None, Cin, TQ), lambda b, t: (b, 0, t)),   # deq tile
                pl.BlockSpec((None, SC, TQ), lambda b, t: (b, 0, t)),    # q tile
            ],
        ),
        compiler_params=pltpu.CompilerParams(
            dimension_semantics=("parallel", "parallel"),   # B and HW tiles split across TCs
            vmem_limit_bytes=vmem_limit,
        ),
    )(x, w1, b1, w2, b2, mask)

    # Back to PyTorch NCHW convention -- plain reshapes, no transposes.
    dequantized = deq.reshape(B, Cin, H, W)
    quantized = q.reshape(B, SC, H, W)
    return dequantized, quantized


def init_params(in_channels, no_quant_channels, no_quant_symbols=2, temp=100.0):
    C_min, C = int(no_quant_channels[0]), int(no_quant_channels[-1])
    S = int(no_quant_symbols)
    key = jax.random.PRNGKey(0)
    k1, k2, k3, k4 = jax.random.split(key, 4)
    return {
        # Conv2d 1x1 weights in (out_channels, in_channels) layout.
        "w1": jax.random.uniform(k1, (S * C, in_channels), jnp.float32, -0.5, 0.5),
        "b1": jax.random.uniform(k2, (S * C,), jnp.float32, -0.1, 0.1),
        "w2": jax.random.uniform(k3, (in_channels, S * C), jnp.float32, -0.25, 0.25),
        "b2": jax.random.uniform(k4, (in_channels,), jnp.float32, -0.1, 0.1),
        # temp only affects the STE backward path (softmax); kept for completeness.
        "temp": jnp.ones((C,), jnp.float32) * temp,
        "no_channels_min": C_min,
        "no_channels": C,
        "no_channel_symbols": S,
    }


if __name__ == "__main__":
    B, Cin, H, W = 2, 4, 16, 16
    no_quant_channels = [2, 8]          # -> no_channels_min=2, no_channels=8
    S = 2                                # no_quant_symbols

    params = init_params(Cin, no_quant_channels, no_quant_symbols=S, temp=100.0)
    C_min, C = params["no_channels_min"], params["no_channels"]

    key = jax.random.PRNGKey(0)
    x = jax.random.normal(jax.random.fold_in(key, 7), (B, Cin, H, W), jnp.float32)

    # ---- scalar channel_percentage (all channels kept) -------------------------------
    dequantized, quantized = quant_layer_forward(x, params, channel_percentage=1.0)
    jax.block_until_ready((dequantized, quantized))

    assert dequantized.shape == (B, Cin, H, W)
    assert quantized.shape == (B, S * C, H, W)

    # Structural invariants of the forward pass (independent of matmul precision):
    q4 = quantized.astype(jnp.float32).reshape(B, S, C, H * W)
    assert bool(jnp.all((q4 == 0.0) | (q4 == 1.0)))       # hard one-hot values
    assert bool(jnp.all(q4.sum(axis=1) == 1.0))           # exactly one symbol per channel
    assert bool(jnp.all(jnp.isfinite(dequantized)))
    assert bool(jnp.all(dequantized >= 0.0))              # trailing ReLU

    # conf_after consistency: deq == relu(W2 @ q + b2) given the kernel's own q
    # (only bf16 rounding of W2 separates kernel from the f32 reference).
    d_ref = jnp.maximum(
        jnp.einsum("oc,bcn->bon", params["w2"],
                   quantized.astype(jnp.float32).reshape(B, S * C, H * W))
        + params["b2"][None, :, None], 0.0)
    assert bool(jnp.allclose(dequantized.reshape(B, Cin, H * W), d_ref,
                             atol=3e-2, rtol=0.0))

    # ---- per-batch channel_percentage (exercises the per-batch mask path) ------------
    pct_b = jnp.array([1.0, 0.5], jnp.float32)
    deq2, q2 = quant_layer_forward(x, params, channel_percentage=pct_b)
    jax.block_until_ready((deq2, q2))
    n_ch = jnp.clip(jnp.round(C_min + pct_b * (C - C_min)), 0, C).astype(jnp.int32)
    mask_exp = (jnp.arange(C)[None, :] < n_ch[:, None]).astype(jnp.float32)   # (B, C)
    q2_4 = q2.astype(jnp.float32).reshape(B, S, C, H * W)
    assert bool(jnp.all(q2_4.sum(axis=1) == mask_exp[:, :, None]))            # masked one-hot

    print("KERNEL_OK")
</pallas_src>

<mosaic_0001>
module attributes {stable_mosaic.version = 11 : i64} {
  func.func @quant_kernel(%arg0: i32, %arg1: i32, %arg2: memref<1x4x256xf32, #tpu.memory_space<vmem>>, %arg3: memref<16x4xbf16, #tpu.memory_space<vmem>>, %arg4: memref<16x1xf32, #tpu.memory_space<vmem>>, %arg5: memref<4x16xbf16, #tpu.memory_space<vmem>>, %arg6: memref<4x1xf32, #tpu.memory_space<vmem>>, %arg7: memref<1x8x1xf32, #tpu.memory_space<vmem>>, %arg8: memref<1x4x256xf32, #tpu.memory_space<vmem>>, %arg9: memref<1x16x256xbf16, #tpu.memory_space<vmem>>) attributes {dimension_semantics = [#tpu.dimension_semantics<parallel>, #tpu.dimension_semantics<parallel>], iteration_bounds = array<i64: 2, 1>, scalar_prefetch = 0 : i64, scratch_operands = 0 : i64, tpu.core_type = #tpu.core_type<tc>, window_params = [{transform_indices = @transform_0, window_bounds = array<i64: 1, 4, 256>}, {pipeline_mode = #tpu.pipeline_mode<synchronous>, transform_indices = @transform_1, window_bounds = array<i64: 16, 4>}, {pipeline_mode = #tpu.pipeline_mode<synchronous>, transform_indices = @transform_2, window_bounds = array<i64: 16, 1>}, {pipeline_mode = #tpu.pipeline_mode<synchronous>, transform_indices = @transform_3, window_bounds = array<i64: 4, 16>}, {pipeline_mode = #tpu.pipeline_mode<synchronous>, transform_indices = @transform_4, window_bounds = array<i64: 4, 1>}, {pipeline_mode = #tpu.pipeline_mode<synchronous>, transform_indices = @transform_5, window_bounds = array<i64: 1, 8, 1>}, {transform_indices = @transform_6, window_bounds = array<i64: 1, 4, 256>}, {transform_indices = @transform_7, window_bounds = array<i64: 1, 16, 256>}]} {
    %c0 = arith.constant 0 : index
    %c0_0 = arith.constant 0 : index
    %c0_1 = arith.constant 0 : index
    %0 = vector.load %arg2[%c0, %c0_0, %c0_1] : memref<1x4x256xf32, #tpu.memory_space<vmem>>, vector<1x4x256xf32>
    %1 = vector.shape_cast %0 : vector<1x4x256xf32> to vector<4x256xf32>
    %cst = arith.constant 0.000000e+00 : f32
    %2 = vector.broadcast %cst : f32 to vector<4x256xf32>
    %3 = arith.maximumf %1, %2 : vector<4x256xf32>
    %c0_2 = arith.constant 0 : index
    %c0_3 = arith.constant 0 : index
    %4 = vector.load %arg3[%c0_2, %c0_3] : memref<16x4xbf16, #tpu.memory_space<vmem>>, vector<16x4xbf16>
    %5 = arith.truncf %3 : vector<4x256xf32> to vector<4x256xbf16>
    %cst_4 = arith.constant dense<0.000000e+00> : vector<16x256xf32>
    %6 = tpu.matmul %4, %5, %cst_4 {dimension_numbers = #tpu.dot_dimension_numbers<[1], [0], [0], [1], [0, 0, 1, 1], [], []>} : vector<16x4xbf16>, vector<4x256xbf16>, vector<16x256xf32> -> vector<16x256xf32>
    %c0_5 = arith.constant 0 : index
    %c0_6 = arith.constant 0 : index
    %7 = vector.load %arg4[%c0_5, %c0_6] : memref<16x1xf32, #tpu.memory_space<vmem>>, vector<16x1xf32>
    %8 = vector.broadcast %7 : vector<16x1xf32> to vector<16x256xf32>
    %9 = arith.addf %6, %8 : vector<16x256xf32>
    %10 = math.absf %9 : vector<16x256xf32>
    %cst_7 = arith.constant 0.000000e+00 : f32
    %11 = vector.broadcast %cst_7 : f32 to vector<16x256xf32>
    %12 = arith.subf %11, %10 : vector<16x256xf32>
    %13 = vector.extract_strided_slice %12 {offsets = [0, 0], sizes = [8, 256], strides = [1, 1]} : vector<16x256xf32> to vector<8x256xf32>
    %c0_i32 = arith.constant 0 : i32
    %14 = vector.broadcast %c0_i32 : i32 to vector<8x256xi32>
    %15 = vector.extract_strided_slice %12 {offsets = [8, 0], sizes = [8, 256], strides = [1, 1]} : vector<16x256xf32> to vector<8x256xf32>
    %16 = arith.cmpf ogt, %15, %13 : vector<8x256xf32>
    %c1_i32 = arith.constant 1 : i32
    %17 = vector.broadcast %c1_i32 : i32 to vector<8x256xi32>
    %18 = arith.select %16, %17, %14 : vector<8x256xi1>, vector<8x256xi32>
    %c0_8 = arith.constant 0 : index
    %c0_9 = arith.constant 0 : index
    %c0_10 = arith.constant 0 : index
    %19 = vector.load %arg7[%c0_8, %c0_9, %c0_10] : memref<1x8x1xf32, #tpu.memory_space<vmem>>, vector<1x8x1xf32>
    %20 = vector.shape_cast %19 : vector<1x8x1xf32> to vector<8x1xf32>
    %c0_i32_11 = arith.constant 0 : i32
    %21 = vector.broadcast %c0_i32_11 : i32 to vector<8x256xi32>
    %22 = arith.cmpi eq, %18, %21 : vector<8x256xi32>
    %cst_12 = arith.constant 0.000000e+00 : f32
    %23 = vector.shape_cast %20 : vector<8x1xf32> to vector<8x1xf32>
    %24 = vector.broadcast %23 : vector<8x1xf32> to vector<8x256xf32>
    %25 = vector.broadcast %cst_12 : f32 to vector<8x256xf32>
    %26 = arith.select %22, %24, %25 : vector<8x256xi1>, vector<8x256xf32>
    %c1_i32_13 = arith.constant 1 : i32
    %27 = vector.broadcast %c1_i32_13 : i32 to vector<8x256xi32>
    %28 = arith.cmpi eq, %18, %27 : vector<8x256xi32>
    %cst_14 = arith.constant 0.000000e+00 : f32
    %29 = vector.shape_cast %20 : vector<8x1xf32> to vector<8x1xf32>
    %30 = vector.broadcast %29 : vector<8x1xf32> to vector<8x256xf32>
    %31 = vector.broadcast %cst_14 : f32 to vector<8x256xf32>
    %32 = arith.select %28, %30, %31 : vector<8x256xi1>, vector<8x256xf32>
    %33 = tpu.concatenate %26, %32 in 0 : vector<8x256xf32>, vector<8x256xf32> -> vector<16x256xf32>
    %34 = arith.truncf %33 : vector<16x256xf32> to vector<16x256xbf16>
    %c0_15 = arith.constant 0 : index
    %c0_16 = arith.constant 0 : index
    %c0_17 = arith.constant 0 : index
    %35 = vector.load %arg9[%c0_15, %c0_16, %c0_17] : memref<1x16x256xbf16, #tpu.memory_space<vmem>>, vector<1x16x256xbf16>
    %36 = vector.shape_cast %35 : vector<1x16x256xbf16> to vector<16x256xbf16>
    %37 = vector.shape_cast %34 : vector<16x256xbf16> to vector<1x16x256xbf16>
    tpu.vector_store %arg9[%c0_15, %c0_16, %c0_17], %37 {strides = array<i32>} : memref<1x16x256xbf16, #tpu.memory_space<vmem>>, vector<1x16x256xbf16>,
    %c0_18 = arith.constant 0 : index
    %c0_19 = arith.constant 0 : index
    %38 = vector.load %arg5[%c0_18, %c0_19] : memref<4x16xbf16, #tpu.memory_space<vmem>>, vector<4x16xbf16>
    %cst_20 = arith.constant dense<0.000000e+00> : vector<4x256xf32>
    %39 = tpu.matmul %38, %34, %cst_20 {dimension_numbers = #tpu.dot_dimension_numbers<[1], [0], [0], [1], [0, 0, 1, 1], [], []>} : vector<4x16xbf16>, vector<16x256xbf16>, vector<4x256xf32> -> vector<4x256xf32>
    %c0_21 = arith.constant 0 : index
    %c0_22 = arith.constant 0 : index
    %40 = vector.load %arg6[%c0_21, %c0_22] : memref<4x1xf32, #tpu.memory_space<vmem>>, vector<4x1xf32>
    %41 = vector.broadcast %40 : vector<4x1xf32> to vector<4x256xf32>
    %42 = arith.addf %39, %41 : vector<4x256xf32>
    %cst_23 = arith.constant 0.000000e+00 : f32
    %43 = vector.broadcast %cst_23 : f32 to vector<4x256xf32>
    %44 = arith.maximumf %42, %43 : vector<4x256xf32>
    %c0_24 = arith.constant 0 : index
    %c0_25 = arith.constant 0 : index
    %c0_26 = arith.constant 0 : index
    %45 = vector.load %arg8[%c0_24, %c0_25, %c0_26] : memref<1x4x256xf32, #tpu.memory_space<vmem>>, vector<1x4x256xf32>
    %46 = vector.shape_cast %45 : vector<1x4x256xf32> to vector<4x256xf32>
    %47 = vector.shape_cast %44 : vector<4x256xf32> to vector<1x4x256xf32>
    tpu.vector_store %arg8[%c0_24, %c0_25, %c0_26], %47 {strides = array<i32>} : memref<1x4x256xf32, #tpu.memory_space<vmem>>, vector<1x4x256xf32>,
    return
  }
  func.func @transform_0(%arg0: i32, %arg1: i32) -> (i32, i32, i32) {
    %c0_i32 = arith.constant 0 : i32
    %c0_i32_0 = arith.constant 0 : i32
    return %arg0, %c0_i32, %arg1 : i32, i32, i32
  }
  func.func @transform_1(%arg0: i32, %arg1: i32) -> (i32, i32) {
    %c0_i32 = arith.constant 0 : i32
    %c0_i32_0 = arith.constant 0 : i32
    %c0_i32_1 = arith.constant 0 : i32
    return %c0_i32, %c0_i32_0 : i32, i32
  }
  func.func @transform_2(%arg0: i32, %arg1: i32) -> (i32, i32) {
    %c0_i32 = arith.constant 0 : i32
    %c0_i32_0 = arith.constant 0 : i32
    %c0_i32_1 = arith.constant 0 : i32
    return %c0_i32, %c0_i32_0 : i32, i32
  }
  func.func @transform_3(%arg0: i32, %arg1: i32) -> (i32, i32) {
    %c0_i32 = arith.constant 0 : i32
    %c0_i32_0 = arith.constant 0 : i32
    %c0_i32_1 = arith.constant 0 : i32
    return %c0_i32, %c0_i32_0 : i32, i32
  }
  func.func @transform_4(%arg0: i32, %arg1: i32) -> (i32, i32) {
    %c0_i32 = arith.constant 0 : i32
    %c0_i32_0 = arith.constant 0 : i32
    %c0_i32_1 = arith.constant 0 : i32
    return %c0_i32, %c0_i32_0 : i32, i32
  }
  func.func @transform_5(%arg0: i32, %arg1: i32) -> (i32, i32, i32) {
    %c0_i32 = arith.constant 0 : i32
    %c0_i32_0 = arith.constant 0 : i32
    %c0_i32_1 = arith.constant 0 : i32
    %c0_i32_2 = arith.constant 0 : i32
    return %c0_i32, %c0_i32_0, %c0_i32_1 : i32, i32, i32
  }
  func.func @transform_6(%arg0: i32, %arg1: i32) -> (i32, i32, i32) {
    %c0_i32 = arith.constant 0 : i32
    %c0_i32_0 = arith.constant 0 : i32
    return %arg0, %c0_i32, %arg1 : i32, i32, i32
  }
  func.func @transform_7(%arg0: i32, %arg1: i32) -> (i32, i32, i32) {
    %c0_i32 = arith.constant 0 : i32
    %c0_i32_0 = arith.constant 0 : i32
    return %arg0, %c0_i32, %arg1 : i32, i32, i32
  }
}

</mosaic_0001>

<bundles_post_ra>
// kernel: tpu_custom_call.1
= control target key start
LH: loop header
LB: loop body
LE: loop exit
PB: predicated region body
PF: predicated region fallthrough
CT: control target
= control target key end

     0   :  { %s1020_s0 = inlined_call_operand.vmem [shape: f32[2,4,256], index: 0, kind: input, shape index: {}]   ;;  %s1021_s1 = inlined_call_operand.vmem [shape: bf16[16,4], index: 1, kind: input, shape index: {}]   ;;  %s1022_s2 = inlined_call_operand.vmem [shape: f32[16,1], index: 2, kind: input, shape index: {}]   ;;  %s1023_s3 = inlined_call_operand.vmem [shape: bf16[4,16], index: 3, kind: input, shape index: {}]   ;;  %s1024_s4 = inlined_call_operand.vmem [shape: f32[4,1], index: 4, kind: input, shape index: {}]   ;;  %s1025_s5 = inlined_call_operand.vmem [shape: f32[1,8,1], index: 5, kind: input, shape index: {}]   ;;  %s1026_s6 = inlined_call_operand.hbm [shape: f32[2,4,256], index: 6, kind: output, shape index: {0}]   ;;  %s1027_s7 = inlined_call_operand.hbm [shape: bf16[2,16,256], index: 7, kind: output, shape index: {1}]  }
   0x1   :  { %1028 = sst [smem:[#allocation8_spill]] %s1020_s0 }
   0x2   :  { %1029 = sst [smem:[#allocation9_spill]] %s1021_s1 }
   0x3   :  { %13 = vsyncpa [#allocation3], 0 }
   0x4   :  { %15 = vsyncpa [#allocation3 + $0x1], 0 }
   0x5   :  { %16 = vsyncpa [#allocation5], 0 }
   0x6   :  { %18 = vsyncpa [#allocation5 + $0x1], 0  ;;  %s885_s24 = smov 0   ;;  %s887_s25 = smov 0  }
   0x7   :  { %s889_s26 = smov 0   ;;  %s891_s27 = smov 0  }
   0x8   :  { %s893_s28 = smov 0   ;;  %s895_s29 = smov 0  }
   0x9 LB: > { %s632_s30 = sadd.s32 4294967295, %s840_s29   ;;  %s633_s8 = sadd.s32 4294967294, %s840_s29   ;;  %s840_s29 = sphi %s895_s29, %s24_s29   ;;  %s836_s28 = sphi %s893_s28, %s1038_s28   ;;  %s832_s27 = sphi %s891_s27, %s1037_s27   ;;  %s828_s26 = sphi %s889_s26, %s1036_s26   ;;  %s824_s25 = sphi %s887_s25, %s1035_s25   ;;  %s820_s24 = sphi %s885_s24, %s1034_s24  }
   0xa   : > { %s36_s9 = sadd.s32 1, %s836_s28  ;;  %s178_s10 = sadd.s32 1, %s828_s26 }
   0xb   : > { %p38_p0 = scmp.ge.s32.totalorder %s36_s9, 2  ;;  %p188_p1 = scmp.ne.s32.totalorder %s828_s26, %s824_s25 }
   0xc   : > { %p189_p2 = scmp.eq.s32.totalorder %s632_s30, 1  ;;  %p194_p3 = scmp.ne.s32.totalorder %s824_s25, %s820_s24 }
   0xd   : > { %s1040_s9 = smov (%p38_p0, %s36_s9), 0  ;;  %p195_p5 = scmp.eq.s32.totalorder %s633_s8, 1 }
   0xe   : > { %p925_p4 = por %p189_p2, %p188_p1  ;;  %s173_s12 = ssub.s32 %s836_s28, %s1040_s9 }
   0xf   : > { %p636_p6 = scmp.ge.s32.totalorder %s840_s29, 1  ;;  %p176_p7 = scmp.eq.s32.totalorder %s173_s12, 0 }
  0x10   : > { %p932_p8 = por %p195_p5, %p194_p3  ;;  %p269_p9 = scmp.lt.s32.totalorder %s840_s29, 3 }
  0x11   : > { %s938_s14 = scalar_select %p176_p7, %s828_s26, %s178_s10  }
  0x12   : > { %p270_p10 = pnand %p636_p6, %p269_p9 }
  0x13   : > { %p311_p11 = scmp.lt.s32.totalorder (!%p270_p10), %s832_s27, 1  ;;  %s1032_s0 = sld [smem:[#allocation8_spill]] (!%p270_p10) }
  0x14   : > { %273 = sbr.rel (%p270_p10) target bundleno = 339 (0x153), region = 44  ;;  %s1033_s1 = sld [smem:[#allocation9_spill]] (!%p270_p10) }
  0x15   : > { %s961_s17 = sand.u32 (!%p270_p10), 1, %s824_s25   ;;  %s664_s22 = sshll.u32 (!%p270_p10), %s832_s27, 4 }
  0x16   : > { %s638_s18 = sshll.u32 (!%p270_p10), %s961_s17, 4  ;;  %s513_s10 = scalar_lea.hbm (!%p270_p10), %s1027_s7, %s664_s22 }
  0x17   : > { %s516_s12 = sshll.u32 (!%p270_p10), %s513_s10, 4  ;;  %s483_s15 = scalar_lea.sflag (!%p270_p10), [#allocation5], %s961_s17  ;;  %s517_s12 = int_to_ptr.hbm [resolvable:$true] %s516_s12 }
  0x18   : > { %s744_s16 = sshra.s32 (!%p270_p10), %s517_s12, 4  ;;  %s745_s16 = int_to_ptr.hbm [resolvable:$true] %s744_s16 }
  0x19   : > { %v335_v0 = vld [vmem:[%s1022_s2] sm:$0xff]  ;;  %v842_v1 = vmov 0   ;;  %s312_s19 = scalar_select %p311_p11, %s832_s27, 1  ;;  %v336_v5 = vld [vmem:[%s1022_s2 + $0x8] sm:$0xff]  ;;  %vm356_vm0 = vcmask 1041408   ;;  %vm352_vm1 = vcmask 31744  }
  0x1a   : > { %728 = vset.pattern.permute.xlu0 %v842_v1  ;;  %729 = vset.pattern.permute.xlu1 %v842_v1  ;;  %v403_v2 = vld [vmem:[%s1025_s5] sm:$0xff]  ;;  %vm438_vm4 = vcmask 130048   ;;  %p751_p1 = scmp.lt.s32.totalorder %s745_s16, %s1027_s7 }
  0x1b   : > { %339 = vperm.xlu0 %728, %v335_v0   ;;  %408 = vperm.xlu1 %729, %v403_v2   ;;  %s661_s20 = sshll.u32 %s312_s19, 3  ;;  %v422_v6 = vld [vmem:[%s1024_s4] sm:$0xf]  ;;  %s309_s19 = scalar_lea.vmem [#allocation4], %s638_s18 }
  0x1c   : > { %s318_s23 = scalar_lea.vmem %s1032_s0, %s661_s20  ;;  %v662_v13 = vld [vmem:[%s1033_s1] sm:$0xff]  ;;  %s746_s18 = scalar_lea.hbm %s745_s16, 16 }
  0x1d   : > { %v323_v3 = vld [vmem:[%s318_s23] sm:$0xff]  ;;  %s514_s23 = sshll.u32 %s309_s19, 4  ;;  %p747_p12 = scmp.ne.s32.totalorder %s745_s16, %s746_s18  ;;  %s515_s23 = int_to_ptr.vmem [resolvable:$true] %s514_s23 }
  0x1e   : > { %v324_v4 = vmax.f32 %v323_v3, 0.0  ;;  %v421_v45 = vld [vmem:[%s1023_s3] sm:$0x3]  ;;  %s750_s0 = scalar_lea.hbm %s1027_s7, 32 }
  0x1f   : > { %p748_p13 = pnand %p747_p12, %p925_p4  ;;  %p752_p2 = scmp.lt.s32.totalorder %s750_s0, %s746_s18 }
  0x20   : > { %328 = vst [vmem:[#allocation1] ss:$2 sm:$0xff] %v324_v4 }
  0x21   : > { %p749_p0 = pneg %p748_p13  ;;  %p753_p3 = por %p752_p2, %p751_p1 }
  0x23   : > { %344 = vperm.xlu0 %728, %v336_v5   ;;  %425 = vperm.xlu1 %729, %v422_v6   ;;  %p754_p5 = pnand %p753_p3, %p749_p0 }
  0x27   : > { %v329_v7 = vld.sshfl [vmem:[#allocation1] sm:$0xff pattern:$0x75316420]  ;;  %v330_v8 = vld.sshfl [vmem:[#allocation1 + $0x8] sm:$0xff pattern:$0x75316420] }
  0x28   : > { %v333_v9 = vpack.c.bf16 %v329_v7, %v329_v7  ;;  %v334_v10 = vpack.c.bf16 %v330_v8, %v330_v8 }
  0x2a   : > { %v358_v11 = vsel %vm356_vm0, %v333_v9, 0  ;;  %v361_v12 = vsel %vm356_vm0, %v334_v10, 0 }
  0x2b   : > { %370 = vmatpush.bf16.msra.mxu0 %v358_v11  ;;  %384 = vmatpush.bf16.msra.mxu1 %v361_v12 }
  0x2e   : > { %645 = vmatmul.msk.bf16.vlgmr.msra.gmra.mxu0 %vm352_vm1, %v662_v13  ;;  %646 = vmatmul.msk.bf16.vlgmr.msra.gmra.mxu1 %vm352_vm1, %v662_v13 }
  0x8d   : > { %v340_v14 = vpop.permute.xlu0 %339  ;;  %v409_v32 = vpop.permute.xlu1 %408 }
  0x95   : > { %v345_v19 = vpop.permute.xlu0 %344 }
  0xab   : > { %v372_v15 = vpop.f32.mrf.mxu0  ;;  %v386_v16 = vpop.f32.mrf.mxu1 }
  0xac   : > { %v373_v17 = vadd.f32 %v372_v15, %v340_v14  ;;  %v387_v18 = vadd.f32 %v386_v16, %v340_v14 }
  0xae   : > { %v391_v22 = vand.u32 2147483647, %v373_v17  ;;  %v392_v23 = vand.u32 2147483647, %v387_v18 }
  0xb0   : > { %v395_v28 = vsub.f32 0.0, %v391_v22  ;;  %v396_v29 = vsub.f32 0.0, %v392_v23 }
  0xb3   : > { %v374_v20 = vpop.f32.mrf.mxu0  ;;  %v388_v21 = vpop.f32.mrf.mxu1 }
  0xb4   : > { %v375_v24 = vadd.f32 %v374_v20, %v345_v19  ;;  %v389_v25 = vadd.f32 %v388_v21, %v345_v19 }
  0xb6   : > { %v393_v26 = vand.u32 2147483647, %v375_v24  ;;  %v394_v27 = vand.u32 2147483647, %v389_v25 }
  0xb8   : > { %v397_v30 = vsub.f32 0.0, %v393_v26  ;;  %v398_v31 = vsub.f32 0.0, %v394_v27 }
  0xba   : > { %vm399_vm2 = vcmp.gt.f32.partialorder %v397_v30, %v395_v28  ;;  %vm400_vm3 = vcmp.gt.f32.partialorder %v398_v31, %v396_v29 }
  0xbb   : > { %v649_v33 = vsel %vm399_vm2, 0.0, %v409_v32  ;;  %v415_v34 = vsel %vm399_vm2, %v409_v32, 0.0  ;;  %v650_v35 = vsel %vm400_vm3, 0.0, %v409_v32  ;;  %v416_v36 = vsel %vm400_vm3, %v409_v32, 0.0 }
  0xbc   : > { %v417_v37 = vpack.c.bf16 %v650_v35, %v649_v33  ;;  %v418_v38 = vpack.c.bf16 %v416_v36, %v415_v34 }
  0xbe   : > { %v430_v39 = vunpack.c.l.b16 %v417_v37  ;;  %v432_v40 = vunpack.c.l.b16 %v418_v38  ;;  %v431_v41 = vunpack.c.h.b16 %v417_v37  ;;  %v433_v42 = vunpack.c.h.b16 %v418_v38  ;;  %419 = vst [vmem:[%s309_s19] sm:$0xff] %v417_v37 }
  0xbf   : > { %420 = vst [vmem:[%s309_s19 + $0x8] sm:$0xff] %v418_v38 }
  0xc0   : > { %v434_v43 = vpack.c.b16 %v432_v40, %v430_v39  ;;  %v435_v44 = vpack.c.b16 %v433_v42, %v431_v41 }
  0xc2   : > { %449 = vmatpush.bf16.msra.mxu2 %v434_v43  ;;  %462 = vmatpush.bf16.msra.mxu3 %v435_v44 }
  0xc5   : > { %651 = vmatmul.msk.bf16.vlgmr.msra.gmra.mxu2 %vm438_vm4, %v421_v45  ;;  %652 = vmatmul.msk.bf16.vlgmr.msra.gmra.mxu3 %vm438_vm4, %v421_v45 }
  0xc6   : > { %757 = shalt.err (!%p754_p5)
}
  0xc7   : > { %s843_s22 = smov 128   ;;  %s844_s30 = smov 8   ;;  %v426_v46 = vpop.permute.xlu1 %425  ;;  %vm473_vm5 = vcmask 1043456  }
  0xc8   : > { %666 = dma.vmem_to_hbm [thread:$0]  (%p925_p4), %s515_s23, 256, %s517_s12, %s483_s15, %s843_s22, %s843_s22, %s844_s30  }
  0xc9   : > { %s637_s8 = sshll.u32 %s961_s17, 3  ;;  %s663_s10 = sshll.u32 %s832_s27, 3 }
  0xca   : > { %s496_s1 = scalar_lea.hbm %s1026_s6, %s663_s10  ;;  %s302_s0 = scalar_lea.vmem [#allocation2], %s637_s8 }
  0xcb   : > { %s498_s16 = sshll.u32 %s302_s0, 4  ;;  %s500_s18 = sshll.u32 %s496_s1, 4  ;;  %s499_s16 = int_to_ptr.vmem [resolvable:$true] %s498_s16  ;;  %s501_s18 = int_to_ptr.hbm [resolvable:$true] %s500_s18 }
  0xcc   : > { %s478_s27 = scalar_lea.sflag [#allocation3], %s961_s17  ;;  %s772_s23 = sshra.s32 %s501_s18, 4  ;;  %s773_s23 = int_to_ptr.hbm [resolvable:$true] %s772_s23 }
  0xcd   : > { %s774_s12 = scalar_lea.hbm %s773_s23, 8  ;;  %s778_s22 = scalar_lea.hbm %s1026_s6, 16 }
  0xce   : > { %p775_p6 = scmp.ne.s32.totalorder %s773_s23, %s774_s12  ;;  %p779_p10 = scmp.lt.s32.totalorder %s773_s23, %s1026_s6 }
  0xcf   : > { %p780_p11 = scmp.lt.s32.totalorder %s778_s22, %s774_s12 }
  0xd0   : > { %p776_p7 = pnand %p775_p6, %p925_p4 }
  0xd1   : > { %p781_p12 = por %p780_p11, %p779_p10 }
  0xd2   : > { %p777_p9 = pneg %p776_p7 }
  0xd4   : > { %p782_p13 = pnand %p781_p12, %p777_p9 }
 0x148   : > { %v451_v47 = vpop.f32.mrf.mxu2  ;;  %v464_v48 = vpop.f32.mrf.mxu3 }
 0x149   : > { %v452_v49 = vadd.f32 %v451_v47, %v426_v46  ;;  %v465_v50 = vadd.f32 %v464_v48, %v426_v46 }
 0x14b   : > { %v469_v51 = vmax.f32 %v465_v50, 0.0  ;;  %v468_v52 = vmax.f32 %v452_v49, 0.0 }
 0x14d   : > { %v472_v53 = vrot.slane %v469_v51, 4 }
 0x14f   : > { %v474_v54 = vsel %vm473_vm5, %v468_v52, %v472_v53 }
 0x150   : > { %v453_v55 = vpop.f32.mrf.mxu2  ;;  %v466_v56 = vpop.f32.mrf.mxu3  ;;  %476 = vst [vmem:[%s302_s0] sm:$0xff] %v474_v54 }
 0x151   : > { %785 = shalt.err (!%p782_p13)
}
 0x152   : > { %665 = dma.vmem_to_hbm [thread:$0]  (%p925_p4), %s499_s16, 128, %s501_s18, %s478_s27  }
 0x153 PF: > { %p676_p0 = scmp.ge.s32.totalorder %s840_s29, 2  ;;  %s531_s17 = sand.u32 1, %s820_s24  }
 0x154   : > { %s532_s10 = scalar_lea.sflag [#allocation3], %s531_s17 }
 0x155   : > { %p670_p1 = pnand %p676_p0, %p932_p8 }
 0x157   : > { %p671_p2 = pneg %p670_p1 }
 0x159   : > { %811 = dma.done.wait (%p671_p2), %s532_s10, 128  }
 0x15a   : > { %813 = vsyncadd (%p671_p2), %s532_s10, 4294967168  ;;  %s542_s20 = scalar_lea.sflag [#allocation5], %s531_s17 }
 0x15b   : > { %815 = dma.done.wait (%p671_p2), %s542_s20, 256  }
 0x15c   : > { %817 = vsyncadd (%p671_p2), %s542_s20, 4294967040  ;;  %s24_s29 = sadd.s32 1, %s840_s29   ;;  %s1034_s24 = smov %s824_s25 }
 0x15d   : > { %p21_p3 = scmp.ge.s32.totalorder %s24_s29, 4   ;;  %s1035_s25 = smov %s828_s26 }
 0x15e   : > { %s1036_s26 = smov %s938_s14  ;;  %s1037_s27 = smov %s836_s28 }
 0x15f   : > { %s1038_s28 = smov %s1040_s9  ;;  %23 = sbr.rel (!%p21_p3) target bundleno = 9 (0x9), region = 96 }
 0x164   :  { %548 = vsyncpa [#allocation3], 1 }
 0x165   :  { %550 = vsyncpa [#allocation3 + $0x1], 1 }
 0x166   :  { %551 = vsyncpa [#allocation5], 1 }
 0x167   :  { %553 = vsyncpa [#allocation5 + $0x1], 1 }

</bundles_post_ra>
